<compile_context>
chip_gen: v6e
topology: v6e:2x2x1
jax: 0.10.0
libtpu: 0.0.40
codegen_flags: <defaults>
</compile_context>

<pallas_src>
import jax
import jax.numpy as jnp
from jax.experimental import pallas as pl
from jax.experimental.pallas import tpu as pltpu


# ~1 MiB of f32 elements per block: big enough to amortize the ~0.35 us
# per-grid-step overhead, small enough that double-buffered inputs plus the
# elementwise intermediates fit comfortably in every generation's scoped VMEM
# (v5e default 16 MiB; we also raise the limit explicitly below).
_MAX_BLOCK_ELEMS = 256 * 1024


def _tv_kernel(x_ref, htv_ref, wtv_ref):
    # x_ref: (TBC, H, W) block of channel-slices.
    x = x_ref[...].astype(jnp.float32)

    hd = x[:, 1:, :] - x[:, :-1, :]   # vertical (H-axis) differences
    wd = x[:, :, 1:] - x[:, :, :-1]   # horizontal (W-axis) differences

    # One partial scalar per grid step, written to this step's own output row
    # (no cross-step accumulation -> safe under "parallel" semantics).
    htv_ref[0, 0] = jnp.sum(hd * hd)
    wtv_ref[0, 0] = jnp.sum(wd * wd)


def _pick_slabs_per_block(n, slab_elems, max_block_elems=_MAX_BLOCK_ELEMS):
    """Choose how many (H, W) slices go into one grid block.

    Returns (tbc, pad) where `pad` is how many zero slabs to append so that
    tbc divides the (padded) number of slabs exactly (zero slabs contribute
    nothing to either TV term).
    """
    max_tbc = int(max(1, min(n, max_block_elems // max(1, slab_elems))))
    best_div = 1
    for t in range(max_tbc, 0, -1):
        if n % t == 0:
            best_div = t
            break
    if best_div * 2 >= max_tbc:
        return best_div, 0                 # good exact divisor, no padding
    pad = (-n) % max_tbc                   # pad with zero slabs instead
    return max_tbc, pad


def tv_loss(x, tv_loss_weight=1.0):
    """TV loss matching the PyTorch TVLoss.forward semantics for NCHW input."""
    b, c, h, w = x.shape
    n = b * c
    x3 = x.reshape(n, h, w)

    tbc, pad = _pick_slabs_per_block(n, h * w)
    if pad:
        # Zero-valued slabs have zero internal differences -> no contribution.
        x3 = jnp.pad(x3, ((0, pad), (0, 0), (0, 0)))
    n_padded = n + pad
    num_blocks = n_padded // tbc

    htv_parts, wtv_parts = pl.pallas_call(
        _tv_kernel,
        out_shape=(
            jax.ShapeDtypeStruct((num_blocks, 1), jnp.float32),
            jax.ShapeDtypeStruct((num_blocks, 1), jnp.float32),
        ),
        grid_spec=pltpu.PrefetchScalarGridSpec(
            num_scalar_prefetch=0,
            grid=(num_blocks,),
            in_specs=[
                pl.BlockSpec((tbc, h, w), lambda i: (i, 0, 0)),
            ],
            out_specs=[
                pl.BlockSpec((1, 1), lambda i: (i, 0),
                             memory_space=pltpu.SMEM),
                pl.BlockSpec((1, 1), lambda i: (i, 0),
                             memory_space=pltpu.SMEM),
            ],
        ),
        compiler_params=pltpu.CompilerParams(
            # Per-block partial outputs are disjoint -> safe to shard the grid
            # across TensorCores (2x on v7x; neutral on v5e/v6e).
            dimension_semantics=("parallel",),
            # Keep double-buffering alive on v5e's small default scoped VMEM.
            vmem_limit_bytes=32 * 1024 * 1024,
        ),
    )(x3)

    h_tv = jnp.sum(htv_parts)
    w_tv = jnp.sum(wtv_parts)

    count_h = c * (h - 1) * w
    count_w = c * h * (w - 1)

    return tv_loss_weight * 2.0 * (h_tv / count_h + w_tv / count_w) / b


if __name__ == "__main__":
    key = jax.random.PRNGKey(0)
    B, C, H, W = 2, 4, 16, 16
    x = jax.random.normal(key, (B, C, H, W), dtype=jnp.float32)

    loss = tv_loss(x, tv_loss_weight=1.0)
    jax.block_until_ready(loss)

    # Pure-JAX reference check (same math as the PyTorch module).
    h_tv_ref = jnp.sum((x[:, :, 1:, :] - x[:, :, :-1, :]) ** 2)
    w_tv_ref = jnp.sum((x[:, :, :, 1:] - x[:, :, :, :-1]) ** 2)
    ref = 2.0 * (h_tv_ref / (C * (H - 1) * W) + w_tv_ref / (C * H * (W - 1))) / B
    assert jnp.allclose(loss, ref, rtol=1e-5, atol=1e-5), (loss, ref)

    print("KERNEL_OK")
</pallas_src>

<mosaic_0001>
module attributes {stable_mosaic.version = 11 : i64} {
  func.func @_tv_kernel(%arg0: i32, %arg1: memref<8x16x16xf32, #tpu.memory_space<vmem>>, %arg2: memref<1x1xf32, #tpu.memory_space<smem>>, %arg3: memref<1x1xf32, #tpu.memory_space<smem>>) attributes {dimension_semantics = [#tpu.dimension_semantics<parallel>], iteration_bounds = array<i64: 1>, scalar_prefetch = 0 : i64, scratch_operands = 0 : i64, tpu.core_type = #tpu.core_type<tc>, window_params = [{transform_indices = @transform_0, window_bounds = array<i64: 8, 16, 16>}, {transform_indices = @transform_1, window_bounds = array<i64: 1, 1>}, {transform_indices = @transform_2, window_bounds = array<i64: 1, 1>}]} {
    %c0 = arith.constant 0 : index
    %c0_0 = arith.constant 0 : index
    %c0_1 = arith.constant 0 : index
    %0 = vector.load %arg1[%c0, %c0_0, %c0_1] : memref<8x16x16xf32, #tpu.memory_space<vmem>>, vector<8x16x16xf32>
    %1 = vector.extract_strided_slice %0 {offsets = [0, 1, 0], sizes = [8, 15, 16], strides = [1, 1, 1]} : vector<8x16x16xf32> to vector<8x15x16xf32>
    %2 = vector.extract_strided_slice %0 {offsets = [0, 0, 0], sizes = [8, 15, 16], strides = [1, 1, 1]} : vector<8x16x16xf32> to vector<8x15x16xf32>
    %3 = arith.subf %1, %2 : vector<8x15x16xf32>
    %4 = vector.extract_strided_slice %0 {offsets = [0, 0, 1], sizes = [8, 16, 15], strides = [1, 1, 1]} : vector<8x16x16xf32> to vector<8x16x15xf32>
    %5 = vector.extract_strided_slice %0 {offsets = [0, 0, 0], sizes = [8, 16, 15], strides = [1, 1, 1]} : vector<8x16x16xf32> to vector<8x16x15xf32>
    %6 = arith.subf %4, %5 : vector<8x16x15xf32>
    %7 = arith.mulf %3, %3 : vector<8x15x16xf32>
    %8 = vector.shape_cast %7 : vector<8x15x16xf32> to vector<1x8x15x16xf32>
    %cst = arith.constant dense<0.000000e+00> : vector<1xf32>
    %9 = vector.multi_reduction <add>, %8, %cst [1, 2, 3] : vector<1x8x15x16xf32> to vector<1xf32>
    %10 = vector.shape_cast %9 : vector<1xf32> to vector<1x1x1x1xf32>
    %11 = vector.extract %10[0, 0, 0, 0] : f32 from vector<1x1x1x1xf32>
    %c0_2 = arith.constant 0 : index
    %c0_3 = arith.constant 0 : index
    %12 = memref.load %arg2[%c0_2, %c0_3] : memref<1x1xf32, #tpu.memory_space<smem>>
    memref.store %11, %arg2[%c0_2, %c0_3] : memref<1x1xf32, #tpu.memory_space<smem>>
    %13 = arith.mulf %6, %6 : vector<8x16x15xf32>
    %14 = vector.shape_cast %13 : vector<8x16x15xf32> to vector<1x8x16x15xf32>
    %cst_4 = arith.constant dense<0.000000e+00> : vector<1xf32>
    %15 = vector.multi_reduction <add>, %14, %cst_4 [1, 2, 3] : vector<1x8x16x15xf32> to vector<1xf32>
    %16 = vector.shape_cast %15 : vector<1xf32> to vector<1x1x1x1xf32>
    %17 = vector.extract %16[0, 0, 0, 0] : f32 from vector<1x1x1x1xf32>
    %c0_5 = arith.constant 0 : index
    %c0_6 = arith.constant 0 : index
    %18 = memref.load %arg3[%c0_5, %c0_6] : memref<1x1xf32, #tpu.memory_space<smem>>
    memref.store %17, %arg3[%c0_5, %c0_6] : memref<1x1xf32, #tpu.memory_space<smem>>
    return
  }
  func.func @transform_0(%arg0: i32) -> (i32, i32, i32) {
    %c0_i32 = arith.constant 0 : i32
    %c0_i32_0 = arith.constant 0 : i32
    %c0_i32_1 = arith.constant 0 : i32
    return %arg0, %c0_i32, %c0_i32_0 : i32, i32, i32
  }
  func.func @transform_1(%arg0: i32) -> (i32, i32) {
    %c0_i32 = arith.constant 0 : i32
    %c0_i32_0 = arith.constant 0 : i32
    return %arg0, %c0_i32 : i32, i32
  }
  func.func @transform_2(%arg0: i32) -> (i32, i32) {
    %c0_i32 = arith.constant 0 : i32
    %c0_i32_0 = arith.constant 0 : i32
    return %arg0, %c0_i32 : i32, i32
  }
}

</mosaic_0001>

<bundles_post_ra>
// kernel: tpu_custom_call.1
= control target key start
LH: loop header
LB: loop body
LE: loop exit
PB: predicated region body
PF: predicated region fallthrough
CT: control target
= control target key end

     0   :  { %8 = vsyncpa [#allocation3], 0  ;;  %s689_s0 = inlined_call_operand.hbm [shape: f32[8,16,16], index: 0, kind: input, shape index: {}]   ;;  %s690_s1 = inlined_call_operand.hbm [shape: f32[1,1], index: 1, kind: output, shape index: {0}]   ;;  %s691_s2 = inlined_call_operand.hbm [shape: f32[1,1], index: 2, kind: output, shape index: {1}]  }
   0x1   :  { %9 = vsyncpa [#allocation4], 0 }
   0x2   :  { %10 = vsyncpa [#allocation7], 0  ;;  %s498_s9 = smov [#allocation2]  }
   0x3   :  { %s16_s10 = sshll.u32 %s498_s9, 4  ;;  %s17_s10 = int_to_ptr.vmem [resolvable:$true] %s16_s10 }
   0x4   :  { %s464_s11 = scalar_lea.vmem %s17_s10, 2048  ;;  %p469_p1 = scmp.lt.s32.totalorder %s17_s10, %s17_s10 }
   0x5   :  { %p465_p0 = scmp.ne.s32.totalorder %s17_s10, %s464_s11  ;;  %p470_p2 = scmp.lt.s32.totalorder %s464_s11, %s464_s11 }
   0x7   :  { %p471_p3 = por %p470_p2, %p469_p1 }
   0x9   :  { %p472_p4 = pnand %p471_p3, %p465_p0 }
   0xb   :  { %475 = shalt.err (!%p472_p4)
}
   0xc   :  { %s499_s12 = smov 128   ;;  %s500_s13 = smov 8  }
   0xd   :  { %22 = dma.hbm_to_vmem [thread:$0]  %s689_s0, 2048, %s17_s10, [#allocation3], %s499_s12, %s499_s12, %s500_s13  }
   0xe   :  { %492 = dma.done.wait [#allocation3], 2048  }
   0xf   :  { %493 = vsyncadd [#allocation3], 4294965248  ;;  %v523_v0 = vld [vmem:[#allocation2] sm:$0xff]  ;;  %v525_v1 = vld [vmem:[#allocation2 + $0x10] sm:$0xff]  ;;  %s501_s16 = smov 1   ;;  %vm58_vm0 = vcmask 1040384  }
  0x10   :  { %115 = vrot.lane.b32.xlu0 %v523_v0, %s501_s16  ;;  %119 = vrot.lane.b32.xlu1 %v525_v1, %s501_s16  ;;  %v529_v2 = vld [vmem:[#allocation2 + $0x8] sm:$0xff]  ;;  %v531_v3 = vld [vmem:[#allocation2 + $0x18] sm:$0xff]  ;;  %v535_v4 = vld [vmem:[#allocation2 + $0x20] sm:$0xff]  ;;  %v59_v16 = vrot.slane %v523_v0, 7  ;;  %v62_v18 = vrot.slane %v525_v1, 7  ;;  %vm211_vm1 = vcmask 1046528  }
  0x11   :  { %v537_v5 = vld [vmem:[#allocation2 + $0x28] sm:$0xff]  ;;  %v541_v6 = vld [vmem:[#allocation2 + $0x30] sm:$0xff]  ;;  %v543_v7 = vld [vmem:[#allocation2 + $0x38] sm:$0xff]  ;;  %v60_v17 = vrot.slane %v529_v2, 7  ;;  %v63_v20 = vrot.slane %v531_v3, 7  ;;  %v65_v28 = vrot.slane %v535_v4, 7 }
  0x12   :  { %v547_v8 = vld [vmem:[#allocation2 + $0x40] sm:$0xff]  ;;  %v549_v9 = vld [vmem:[#allocation2 + $0x48] sm:$0xff]  ;;  %v553_v10 = vld [vmem:[#allocation2 + $0x50] sm:$0xff]  ;;  %v99_v21 = vsub.f32 %v523_v0, %v59_v16  ;;  %v101_v25 = vsub.f32 %v525_v1, %v62_v18  ;;  %v66_v29 = vrot.slane %v537_v5, 7  ;;  %vm252_vm2 = vcmask 130048   ;;  %s502_s0 = smov 127  }
  0x13   :  { %v555_v11 = vld [vmem:[#allocation2 + $0x58] sm:$0xff]  ;;  %v559_v12 = vld [vmem:[#allocation2 + $0x60] sm:$0xff]  ;;  %v561_v13 = vld [vmem:[#allocation2 + $0x68] sm:$0xff]  ;;  %v61_v19 = vsel %vm58_vm0, %v59_v16, %v60_v17  ;;  %v64_v23 = vsel %vm58_vm0, %v62_v18, %v63_v20  ;;  %vm254_vm3 = vcmask 129024   ;;  %v103_v35 = vsub.f32 %v535_v4, %v65_v28  ;;  %s503_s18 = smov [#allocation5]   ;;  %s504_s22 = smov [#allocation6]  }
  0x14   :  { %117 = vrot.lane.b32.xlu0 %v529_v2, %s501_s16  ;;  %121 = vrot.lane.b32.xlu1 %v531_v3, %s501_s16  ;;  %v565_v14 = vld [vmem:[#allocation2 + $0x70] sm:$0xff]  ;;  %v567_v15 = vld [vmem:[#allocation2 + $0x78] sm:$0xff]  ;;  %v100_v22 = vsub.f32 %v529_v2, %v61_v19  ;;  %v179_v24 = vmul.f32 %v99_v21, %v99_v21  ;;  %v102_v27 = vsub.f32 %v531_v3, %v64_v23  ;;  %v68_v40 = vrot.slane %v541_v6, 7 }
  0x15   :  { %v181_v31 = vmul.f32 %v101_v25, %v101_v25  ;;  %v67_v34 = vsel %vm58_vm0, %v65_v28, %v66_v29  ;;  %v69_v41 = vrot.slane %v543_v7, 7  ;;  %v183_v49 = vmul.f32 %v103_v35, %v103_v35 }
  0x16   :  { %v180_v26 = vmul.f32 %v100_v22, %v100_v22  ;;  %v212_v30 = vrot.slane %v179_v24, 1  ;;  %v182_v33 = vmul.f32 %v102_v27, %v102_v27  ;;  %v104_v39 = vsub.f32 %v537_v5, %v67_v34 }
  0x17   :  { %v215_v36 = vrot.slane %v181_v31, 1  ;;  %v70_v51 = vsel %vm58_vm0, %v68_v40, %v69_v41  ;;  %v218_v60 = vrot.slane %v183_v49, 1  ;;  %v105_v62 = vsub.f32 %v541_v6, %v68_v40 }
  0x18   :  { %123 = vrot.lane.b32.xlu0 %v535_v4, %s501_s16  ;;  %125 = vrot.lane.b32.xlu1 %v537_v5, %s501_s16  ;;  %v213_v32 = vrot.slane %v180_v26, 1  ;;  %v216_v38 = vrot.slane %v182_v33, 1  ;;  %v184_v50 = vmul.f32 %v104_v39, %v104_v39  ;;  %v106_v63 = vsub.f32 %v543_v7, %v70_v51 }
  0x19   :  { %v185_v23 = vmul.f32 %v105_v62, %v105_v62  ;;  %vm376_vm4 = vcmask 121856  }
  0x1a   :  { %v214_v37 = vsel %vm211_vm1, %v212_v30, %v213_v32  ;;  %v255_v45 = vsel %vm254_vm3, %v213_v32, 0.0  ;;  %v217_v48 = vsel %vm211_vm1, %v215_v36, %v216_v38  ;;  %v219_v61 = vrot.slane %v184_v50, 1 }
  0x1b   :  { %v253_v44 = vsel %vm252_vm2, %v214_v37, 0.0  ;;  %v257_v56 = vsel %vm252_vm2, %v217_v48, 0.0  ;;  %v186_v24 = vmul.f32 %v106_v63, %v106_v63  ;;  %v74_v36 = vrot.slane %v553_v10, 7 }
  0x1c   :  { %127 = vrot.lane.b32.xlu0 %v541_v6, %s501_s16  ;;  %129 = vrot.lane.b32.xlu1 %v543_v7, %s501_s16  ;;  %v256_v53 = vadd.f32 %v255_v45, %v253_v44  ;;  %v220_v22 = vsel %vm211_vm1, %v218_v60, %v219_v61  ;;  %v75_v37 = vrot.slane %v555_v11, 7 }
  0x1d   :  { %v261_v30 = vsel %vm252_vm2, %v220_v22, 0.0  ;;  %v222_v33 = vrot.slane %v186_v24, 1 }
  0x1e   :  { %v258_v17 = vadd.f32 %v257_v56, %v256_v53  ;;  %v109_v56 = vsub.f32 %v553_v10, %v74_v36 }
  0x20   :  { %131 = vrot.lane.b32.xlu0 %v547_v8, %s501_s16  ;;  %133 = vrot.lane.b32.xlu1 %v549_v9, %s501_s16 }
  0x24   :  { %135 = vrot.lane.b32.xlu0 %v553_v10, %s501_s16  ;;  %137 = vrot.lane.b32.xlu1 %v555_v11, %s501_s16 }
  0x28   :  { %139 = vrot.lane.b32.xlu0 %v559_v12, %s501_s16  ;;  %141 = vrot.lane.b32.xlu1 %v561_v13, %s501_s16 }
  0x2c   :  { %143 = vrot.lane.b32.xlu0 %v565_v14, %s501_s16  ;;  %145 = vrot.lane.b32.xlu1 %v567_v15, %s501_s16 }
  0x82   :  { %v116_v42 = vpop.permute.xlu0 %115  ;;  %v120_v43 = vpop.permute.xlu1 %119 }
  0x83   :  { %v163_v46 = vsub.f32 %v523_v0, %v116_v42  ;;  %v165_v47 = vsub.f32 %v525_v1, %v120_v43  ;;  %v71_v0 = vrot.slane %v547_v8, 7  ;;  %v72_v1 = vrot.slane %v549_v9, 7 }
  0x85   :  { %v296_v52 = vmul.f32 %v163_v46, %v163_v46  ;;  %v298_v57 = vmul.f32 %v165_v47, %v165_v47  ;;  %v73_v25 = vsel %vm58_vm0, %v71_v0, %v72_v1  ;;  %v107_v34 = vsub.f32 %v547_v8, %v71_v0 }
  0x86   :  { %v118_v54 = vpop.permute.xlu0 %117  ;;  %v122_v55 = vpop.permute.xlu1 %121  ;;  %v108_v35 = vsub.f32 %v549_v9, %v73_v25  ;;  %v76_v47 = vsel %vm58_vm0, %v74_v36, %v75_v37  ;;  %v267_v0 = vsel %vm254_vm3, %v222_v33, 0.0 }
  0x87   :  { %v164_v58 = vsub.f32 %v529_v2, %v118_v54  ;;  %328 = vrot.lane.b32.xlu0 %v296_v52, %s502_s0  ;;  %v166_v59 = vsub.f32 %v531_v3, %v122_v55  ;;  %v259_v2 = vsel %vm254_vm3, %v216_v38, 0.0  ;;  %v187_v45 = vmul.f32 %v107_v34, %v107_v34 }
  0x88   :  { %v260_v27 = vadd.f32 %v259_v2, %v258_v17  ;;  %v188_v46 = vmul.f32 %v108_v35, %v108_v35  ;;  %v189_v17 = vmul.f32 %v109_v56, %v109_v56 }
  0x89   :  { %v297_v16 = vmul.f32 %v164_v58, %v164_v58  ;;  %v299_v20 = vmul.f32 %v166_v59, %v166_v59  ;;  %v224_v54 = vrot.slane %v187_v45, 1  ;;  %v77_v58 = vrot.slane %v559_v12, 7 }
  0x8a   :  { %v124_v18 = vpop.permute.xlu0 %123  ;;  %v126_v19 = vpop.permute.xlu1 %125  ;;  %v262_v39 = vadd.f32 %v261_v30, %v260_v27  ;;  %v225_v55 = vrot.slane %v188_v46, 1  ;;  %v78_v59 = vrot.slane %v561_v13, 7  ;;  %v80_v30 = vrot.slane %v565_v14, 7 }
  0x8b   :  { %332 = vrot.lane.b32.xlu0 %v298_v57, %s502_s0  ;;  %330 = vrot.lane.b32.xlu1 %v297_v16, %s502_s0  ;;  %v167_v3 = vsub.f32 %v535_v4, %v124_v18  ;;  %v168_v21 = vsub.f32 %v537_v5, %v126_v19  ;;  %v221_v5 = vrot.slane %v185_v23, 1  ;;  %v110_v57 = vsub.f32 %v555_v11, %v76_v47 }
  0x8c   :  { %v79_v19 = vsel %vm58_vm0, %v77_v58, %v78_v59 }
  0x8d   :  { %v300_v26 = vmul.f32 %v167_v3, %v167_v3  ;;  %v301_v31 = vmul.f32 %v168_v21, %v168_v21  ;;  %v223_v44 = vsel %vm211_vm1, %v221_v5, %v222_v33  ;;  %v190_v18 = vmul.f32 %v110_v57, %v110_v57 }
  0x8e   :  { %v128_v28 = vpop.permute.xlu0 %127  ;;  %v130_v29 = vpop.permute.xlu1 %129  ;;  %v265_v52 = vsel %vm252_vm2, %v223_v44, 0.0  ;;  %v271_v5 = vsel %vm254_vm3, %v225_v55, 0.0 }
  0x8f   :  { %334 = vrot.lane.b32.xlu1 %v299_v20, %s502_s0  ;;  %v169_v32 = vsub.f32 %v541_v6, %v128_v28  ;;  %336 = vrot.lane.b32.xlu0 %v300_v26, %s502_s0  ;;  %v170_v4 = vsub.f32 %v543_v7, %v130_v29  ;;  %v263_v6 = vsel %vm254_vm3, %v219_v61, 0.0  ;;  %v227_v26 = vrot.slane %v189_v17, 1 }
  0x90   :  { %v264_v49 = vadd.f32 %v263_v6, %v262_v39  ;;  %v228_v27 = vrot.slane %v190_v18, 1  ;;  %v111_v28 = vsub.f32 %v559_v12, %v77_v58  ;;  %v112_v29 = vsub.f32 %v561_v13, %v79_v19 }
  0x91   :  { %v302_v38 = vmul.f32 %v169_v32, %v169_v32  ;;  %v303_v42 = vmul.f32 %v170_v4, %v170_v4  ;;  %v113_v39 = vsub.f32 %v565_v14, %v80_v30 }
  0x92   :  { %v132_v40 = vpop.permute.xlu0 %131  ;;  %v134_v41 = vpop.permute.xlu1 %133  ;;  %v266_v61 = vadd.f32 %v265_v52, %v264_v49  ;;  %v229_v34 = vsel %vm211_vm1, %v227_v26, %v228_v27  ;;  %v191_v35 = vmul.f32 %v111_v28, %v111_v28  ;;  %v192_v36 = vmul.f32 %v112_v29, %v112_v29 }
  0x93   :  { %338 = vrot.lane.b32.xlu1 %v301_v31, %s502_s0  ;;  %v171_v7 = vsub.f32 %v547_v8, %v132_v40  ;;  %340 = vrot.lane.b32.xlu0 %v302_v38, %s502_s0  ;;  %v172_v43 = vsub.f32 %v549_v9, %v134_v41  ;;  %v81_v31 = vrot.slane %v567_v15, 7  ;;  %v273_v37 = vsel %vm252_vm2, %v229_v34, 0.0 }
  0x94   :  { %v268_v20 = vadd.f32 %v267_v0, %v266_v61  ;;  %v230_v38 = vrot.slane %v191_v35, 1  ;;  %v231_v41 = vrot.slane %v192_v36, 1 }
  0x95   :  { %v304_v48 = vmul.f32 %v171_v7, %v171_v7  ;;  %v305_v53 = vmul.f32 %v172_v43, %v172_v43  ;;  %v193_v7 = vmul.f32 %v113_v39, %v113_v39 }
  0x96   :  { %v136_v50 = vpop.permute.xlu0 %135  ;;  %v138_v51 = vpop.permute.xlu1 %137  ;;  %v232_v44 = vsel %vm211_vm1, %v230_v38, %v231_v41 }
  0x97   :  { %342 = vrot.lane.b32.xlu1 %v303_v42, %s502_s0  ;;  %v173_v8 = vsub.f32 %v553_v10, %v136_v50  ;;  %344 = vrot.lane.b32.xlu0 %v304_v48, %s502_s0  ;;  %v174_v9 = vsub.f32 %v555_v11, %v138_v51  ;;  %v226_v11 = vsel %vm211_vm1, %v224_v54, %v225_v55  ;;  %v275_v42 = vsel %vm254_vm3, %v228_v27, 0.0 }
  0x98   :  { %v269_v22 = vsel %vm252_vm2, %v226_v11, 0.0  ;;  %v277_v46 = vsel %vm252_vm2, %v232_v44, 0.0  ;;  %v233_v47 = vrot.slane %v193_v7, 1  ;;  %v279_v50 = vsel %vm254_vm3, %v231_v41, 0.0 }
  0x99   :  { %v306_v60 = vmul.f32 %v173_v8, %v173_v8  ;;  %v307_v1 = vmul.f32 %v174_v9, %v174_v9  ;;  %v270_v4 = vadd.f32 %v269_v22, %v268_v20 }
  0x9a   :  { %v140_v62 = vpop.permute.xlu0 %139  ;;  %v142_v63 = vpop.permute.xlu1 %141 }
  0x9b   :  { %346 = vrot.lane.b32.xlu1 %v305_v53, %s502_s0  ;;  %v175_v16 = vsub.f32 %v559_v12, %v140_v62  ;;  %348 = vrot.lane.b32.xlu0 %v306_v60, %s502_s0  ;;  %v176_v10 = vsub.f32 %v561_v13, %v142_v63  ;;  %v82_v12 = vsel %vm58_vm0, %v80_v30, %v81_v31 }
  0x9c   :  { %v272_v13 = vadd.f32 %v271_v5, %v270_v4  ;;  %v114_v40 = vsub.f32 %v567_v15, %v82_v12 }
  0x9d   :  { %v308_v2 = vmul.f32 %v175_v16, %v175_v16  ;;  %v309_v23 = vmul.f32 %v176_v10, %v176_v10 }
  0x9e   :  { %v144_v3 = vpop.permute.xlu0 %143  ;;  %v146_v21 = vpop.permute.xlu1 %145  ;;  %v274_v6 = vadd.f32 %v273_v37, %v272_v13  ;;  %v194_v43 = vmul.f32 %v114_v40, %v114_v40 }
  0x9f   :  { %350 = vrot.lane.b32.xlu1 %v307_v1, %s502_s0  ;;  %v177_v24 = vsub.f32 %v565_v14, %v144_v3  ;;  %352 = vrot.lane.b32.xlu0 %v308_v2, %s502_s0  ;;  %v178_v25 = vsub.f32 %v567_v15, %v146_v21 }
  0xa0   :  { %v276_v45 = vadd.f32 %v275_v42, %v274_v6  ;;  %v234_v48 = vrot.slane %v194_v43, 1 }
  0xa1   :  { %v310_v32 = vmul.f32 %v177_v24, %v177_v24  ;;  %v311_v33 = vmul.f32 %v178_v25, %v178_v25 }
  0xa2   :  { %v278_v49 = vadd.f32 %v277_v46, %v276_v45  ;;  %v235_v14 = vsel %vm211_vm1, %v233_v47, %v234_v48  ;;  %v283_v53 = vsel %vm254_vm3, %v234_v48, 0.0 }
  0xa3   :  { %354 = vrot.lane.b32.xlu1 %v309_v23, %s502_s0  ;;  %356 = vrot.lane.b32.xlu0 %v310_v32, %s502_s0  ;;  %v281_v15 = vsel %vm252_vm2, %v235_v14, 0.0 }
  0xa4   :  { %v280_v51 = vadd.f32 %v279_v50, %v278_v49 }
  0xa6   :  { %v282_v52 = vadd.f32 %v281_v15, %v280_v51 }
  0xa7   :  { %358 = vrot.lane.b32.xlu1 %v311_v33, %s502_s0 }
  0xa8   :  { %v284_v8 = vadd.f32 %v283_v53, %v282_v52 }
  0xc2   :  { %285 = vadd.xlane.f32.xlu0 %v284_v8 }
  0xf9   :  { %v329_v9 = vpop.permute.xlu0 %328 }
  0xfa   :  { %v377_v56 = vsel %vm376_vm4, %v329_v9, 0.0 }
  0xfd   :  { %v331_v54 = vpop.permute.xlu1 %330  ;;  %v333_v55 = vpop.permute.xlu0 %332 }
  0xfe   :  { %v378_v57 = vsel %vm376_vm4, %v331_v54, 0.0  ;;  %v380_v59 = vsel %vm376_vm4, %v333_v55, 0.0 }
  0xff   :  { %v379_v58 = vadd.f32 %v378_v57, %v377_v56 }
 0x101   :  { %v381_v60 = vadd.f32 %v380_v59, %v379_v58  ;;  %v335_v61 = vpop.permute.xlu1 %334  ;;  %v337_v62 = vpop.permute.xlu0 %336 }
 0x102   :  { %v382_v63 = vsel %vm376_vm4, %v335_v61, 0.0  ;;  %v384_v0 = vsel %vm376_vm4, %v337_v62, 0.0 }
 0x103   :  { %v383_v1 = vadd.f32 %v382_v63, %v381_v60 }
 0x105   :  { %v385_v16 = vadd.f32 %v384_v0, %v383_v1  ;;  %v339_v10 = vpop.permute.xlu1 %338  ;;  %v341_v11 = vpop.permute.xlu0 %340 }
 0x106   :  { %v386_v17 = vsel %vm376_vm4, %v339_v10, 0.0  ;;  %v388_v18 = vsel %vm376_vm4, %v341_v11, 0.0 }
 0x107   :  { %v387_v19 = vadd.f32 %v386_v17, %v385_v16 }
 0x109   :  { %v389_v2 = vadd.f32 %v388_v18, %v387_v19  ;;  %v343_v20 = vpop.permute.xlu1 %342  ;;  %v345_v3 = vpop.permute.xlu0 %344 }
 0x10a   :  { %v390_v21 = vsel %vm376_vm4, %v343_v20, 0.0  ;;  %v392_v22 = vsel %vm376_vm4, %v345_v3, 0.0 }
 0x10b   :  { %v391_v23 = vadd.f32 %v390_v21, %v389_v2 }
 0x10d   :  { %v393_v24 = vadd.f32 %v392_v22, %v391_v23  ;;  %v347_v25 = vpop.permute.xlu1 %346  ;;  %v349_v26 = vpop.permute.xlu0 %348 }
 0x10e   :  { %v394_v27 = vsel %vm376_vm4, %v347_v25, 0.0  ;;  %v396_v28 = vsel %vm376_vm4, %v349_v26, 0.0 }
 0x10f   :  { %v395_v29 = vadd.f32 %v394_v27, %v393_v24 }
 0x111   :  { %v397_v30 = vadd.f32 %v396_v28, %v395_v29  ;;  %v351_v31 = vpop.permute.xlu1 %350  ;;  %v353_v32 = vpop.permute.xlu0 %352 }
 0x112   :  { %v398_v4 = vsel %vm376_vm4, %v351_v31, 0.0  ;;  %v400_v5 = vsel %vm376_vm4, %v353_v32, 0.0 }
 0x113   :  { %v399_v33 = vadd.f32 %v398_v4, %v397_v30 }
 0x115   :  { %v401_v34 = vadd.f32 %v400_v5, %v399_v33  ;;  %v355_v35 = vpop.permute.xlu1 %354  ;;  %v357_v36 = vpop.permute.xlu0 %356 }
 0x116   :  { %v402_v12 = vsel %vm376_vm4, %v355_v35, 0.0  ;;  %v404_v13 = vsel %vm376_vm4, %v357_v36, 0.0 }
 0x117   :  { %v403_v37 = vadd.f32 %v402_v12, %v401_v34 }
 0x119   :  { %v405_v38 = vadd.f32 %v404_v13, %v403_v37  ;;  %v359_v39 = vpop.permute.xlu1 %358 }
 0x11a   :  { %v406_v40 = vsel %vm376_vm4, %v359_v39, 0.0 }
 0x11b   :  { %v407_v41 = vadd.f32 %v406_v40, %v405_v38 }
 0x11d   :  { %408 = vadd.xlane.f32.xlu1 %v407_v41 }
 0x14b   :  { %v286_v6 = vpop.xlane.xlu0 %285 }
 0x14c   :  { %v287_v42 = vrot.slane %v286_v6, 4 }
 0x14e   :  { %v288_v7 = vadd.f32 %v287_v42, %v286_v6 }
 0x150   :  { %v289_v43 = vrot.slane %v288_v7, 2 }
 0x152   :  { %v290_v44 = vadd.f32 %v289_v43, %v288_v7 }
 0x154   :  { %v291_v45 = vrot.slane %v290_v44, 1 }
 0x156   :  { %v292_v46 = vadd.f32 %v291_v45, %v290_v44 }
 0x158   :  { %445 = vpush %v292_v46 }
 0x189   :  { %s446_s17 = spop %445 }
 0x18a   :  { %295 = sst [smem:[#allocation5]] %s446_s17 }
 0x18b   :  { %426 = dma.smem_to_hbm %s503_s18, 16, %s690_s1, [#allocation4]  }
 0x1a6   :  { %v409_v47 = vpop.xlane.xlu1 %408 }
 0x1a7   :  { %v410_v48 = vrot.slane %v409_v47, 4 }
 0x1a9   :  { %v411_v49 = vadd.f32 %v410_v48, %v409_v47 }
 0x1ab   :  { %v412_v50 = vrot.slane %v411_v49, 2 }
 0x1ad   :  { %v413_v14 = vadd.f32 %v412_v50, %v411_v49 }
 0x1af   :  { %v414_v51 = vrot.slane %v413_v14, 1 }
 0x1b1   :  { %v415_v15 = vadd.f32 %v414_v51, %v413_v14 }
 0x1b3   :  { %447 = vpush %v415_v15 }
 0x1e4   :  { %s448_s21 = spop %447 }
 0x1e5   :  { %418 = sst [smem:[#allocation6]] %s448_s21 }
 0x1e6   :  { %434 = dma.smem_to_hbm %s504_s22, 16, %s691_s2, [#allocation7]  }
 0x1e7   :  { %494 = dma.done.wait [#allocation4], 16  }
 0x1e8   :  { %495 = vsyncadd [#allocation4], 4294967280 }
 0x1e9   :  { %496 = dma.done.wait [#allocation7], 16  }
 0x1ea   :  { %497 = vsyncadd [#allocation7], 4294967280 }
 0x1eb   :  { %441 = sfence }
 0x1ec   :  { %442 = vsyncpa [#allocation3], 1 }
 0x1ed   :  { %443 = vsyncpa [#allocation4], 1 }
 0x1ee   :  { %444 = vsyncpa [#allocation7], 1 }

</bundles_post_ra>
